<compile_context>
chip_gen: v6e
topology: v6e:2x2x1
jax: 0.10.0
libtpu: 0.0.40
codegen_flags: <defaults>
</compile_context>

<pallas_src>
import jax
import jax.numpy as jnp
from jax.experimental import pallas as pl
from jax.experimental.pallas import tpu as pltpu

IN_DIM = 638
HID_DIM = 128
OUT_DIM = 4


def mlp_kernel(x_ref, w1_ref, b1_ref, w2_ref, b2_ref, o_ref):
    # Layer 1: bf16 MXU inputs, f32 accumulation; bias + tanh stay f32 (VPU/EUP).
    x = x_ref[...].astype(jnp.bfloat16)
    w1 = w1_ref[...].astype(jnp.bfloat16)
    h = jnp.dot(x, w1, preferred_element_type=jnp.float32)
    h = jnp.tanh(h + b1_ref[...])
    # Layer 2: (tb,128)bf16 @ (128,4)bf16 -> narrow f32 output block.
    w2 = w2_ref[...].astype(jnp.bfloat16)
    y = jnp.dot(h.astype(jnp.bfloat16), w2, preferred_element_type=jnp.float32)
    o_ref[...] = y + b2_ref[...]


def _cdiv(a, b):
    return (a + b - 1) // b


def _round_up(n, m):
    return ((n + m - 1) // m) * m


def simple_agent_net(x, w1, b1, w2, b2, *, tb_max=2048):
    """Forward pass of SimpleAgentNet: tanh(x @ w1 + b1) @ w2 + b2.

    x: (B, 638) f32; w1: (638, 128); b1: (1, 128); w2: (128, 4); b2: (1, 4).
    Returns (B, 4) f32.
    """
    B = x.shape[0]
    # Batch tile: big enough to amortize per-step overhead, small enough to
    # give >= 2 tiles when B allows it (v7x dual TensorCores) and to stay
    # inside the default 32 MiB scoped-VMEM limit with double buffering.
    tb = max(8, min(tb_max, _round_up(_cdiv(max(B, 1), 2), 8)))
    n_tiles = _cdiv(B, tb)

    cost = pl.CostEstimate(
        flops=2 * B * (IN_DIM * HID_DIM + HID_DIM * OUT_DIM),
        transcendentals=B * HID_DIM,
        bytes_accessed=(x.size * 4 + w1.size * 4 + b1.size * 4
                        + w2.size * 4 + b2.size * 4 + B * OUT_DIM * 4),
    )

    return pl.pallas_call(
        mlp_kernel,
        out_shape=jax.ShapeDtypeStruct((B, OUT_DIM), jnp.float32),
        grid_spec=pl.GridSpec(
            grid=(n_tiles,),
            in_specs=[
                pl.BlockSpec((tb, IN_DIM), lambda i: (i, 0)),        # x batch tile
                pl.BlockSpec((IN_DIM, HID_DIM), lambda i: (0, 0)),   # w1 (resident)
                pl.BlockSpec((1, HID_DIM), lambda i: (0, 0)),        # b1 (resident)
                pl.BlockSpec((HID_DIM, OUT_DIM), lambda i: (0, 0)),  # w2 (resident)
                pl.BlockSpec((1, OUT_DIM), lambda i: (0, 0)),        # b2 (resident)
            ],
            out_specs=pl.BlockSpec((tb, OUT_DIM), lambda i: (i, 0)),
        ),
        compiler_params=pltpu.CompilerParams(
            dimension_semantics=("parallel",),
        ),
        cost_estimate=cost,
    )(x, w1, b1, w2, b2)


def init_params(key):
    # Deterministic init mirroring PyTorch nn.Linear defaults:
    # U(-1/sqrt(fan_in), 1/sqrt(fan_in)) for both weight and bias.
    k1, k2, k3, k4 = jax.random.split(key, 4)
    bound1 = 1.0 / jnp.sqrt(IN_DIM)
    bound2 = 1.0 / jnp.sqrt(HID_DIM)
    w1 = jax.random.uniform(k1, (IN_DIM, HID_DIM), jnp.float32, -bound1, bound1)
    b1 = jax.random.uniform(k2, (1, HID_DIM), jnp.float32, -bound1, bound1)
    w2 = jax.random.uniform(k3, (HID_DIM, OUT_DIM), jnp.float32, -bound2, bound2)
    b2 = jax.random.uniform(k4, (1, OUT_DIM), jnp.float32, -bound2, bound2)
    return w1, b1, w2, b2


if __name__ == "__main__":
    key = jax.random.PRNGKey(0)
    k_params, k_x = jax.random.split(key)
    w1, b1, w2, b2 = init_params(k_params)

    B = 8
    x = jax.random.normal(k_x, (B, IN_DIM), jnp.float32)

    out = jax.block_until_ready(simple_agent_net(x, w1, b1, w2, b2))

    # Pure-JAX f32 reference; tolerance relaxed because matmul inputs are bf16
    # (accumulation stays f32 via preferred_element_type).
    ref = jnp.tanh(x @ w1 + b1) @ w2 + b2
    assert out.shape == (B, OUT_DIM)
    assert jnp.allclose(out, ref, atol=2e-2, rtol=2e-2)

    print("KERNEL_OK")
</pallas_src>

<mosaic_0001>
module attributes {stable_mosaic.version = 11 : i64} {
  func.func @mlp_kernel(%arg0: i32, %arg1: memref<8x638xf32, #tpu.memory_space<vmem>>, %arg2: memref<638x128xf32, #tpu.memory_space<vmem>>, %arg3: memref<1x128xf32, #tpu.memory_space<vmem>>, %arg4: memref<128x4xf32, #tpu.memory_space<vmem>>, %arg5: memref<1x4xf32, #tpu.memory_space<vmem>>, %arg6: memref<8x4xf32, #tpu.memory_space<vmem>>) attributes {dimension_semantics = [#tpu.dimension_semantics<parallel>], iteration_bounds = array<i64: 1>, scalar_prefetch = 0 : i64, scratch_operands = 0 : i64, tpu.core_type = #tpu.core_type<tc>, window_params = [{transform_indices = @transform_0, window_bounds = array<i64: 8, 638>}, {pipeline_mode = #tpu.pipeline_mode<synchronous>, transform_indices = @transform_1, window_bounds = array<i64: 638, 128>}, {pipeline_mode = #tpu.pipeline_mode<synchronous>, transform_indices = @transform_2, window_bounds = array<i64: 1, 128>}, {pipeline_mode = #tpu.pipeline_mode<synchronous>, transform_indices = @transform_3, window_bounds = array<i64: 128, 4>}, {pipeline_mode = #tpu.pipeline_mode<synchronous>, transform_indices = @transform_4, window_bounds = array<i64: 1, 4>}, {transform_indices = @transform_5, window_bounds = array<i64: 8, 4>}]} {
    %c0 = arith.constant 0 : index
    %c0_0 = arith.constant 0 : index
    %0 = vector.load %arg1[%c0, %c0_0] : memref<8x638xf32, #tpu.memory_space<vmem>>, vector<8x638xf32>
    %1 = arith.truncf %0 : vector<8x638xf32> to vector<8x638xbf16>
    %c0_1 = arith.constant 0 : index
    %c0_2 = arith.constant 0 : index
    %2 = vector.load %arg2[%c0_1, %c0_2] : memref<638x128xf32, #tpu.memory_space<vmem>>, vector<638x128xf32>
    %3 = arith.truncf %2 : vector<638x128xf32> to vector<638x128xbf16>
    %cst = arith.constant dense<0.000000e+00> : vector<8x128xf32>
    %4 = tpu.matmul %1, %3, %cst {dimension_numbers = #tpu.dot_dimension_numbers<[1], [0], [0], [1], [0, 0, 1, 1], [], []>} : vector<8x638xbf16>, vector<638x128xbf16>, vector<8x128xf32> -> vector<8x128xf32>
    %c0_3 = arith.constant 0 : index
    %c0_4 = arith.constant 0 : index
    %5 = vector.load %arg3[%c0_3, %c0_4] : memref<1x128xf32, #tpu.memory_space<vmem>>, vector<1x128xf32>
    %6 = vector.broadcast %5 : vector<1x128xf32> to vector<8x128xf32>
    %7 = arith.addf %4, %6 : vector<8x128xf32>
    %8 = math.tanh %7 : vector<8x128xf32>
    %c0_5 = arith.constant 0 : index
    %c0_6 = arith.constant 0 : index
    %9 = vector.load %arg4[%c0_5, %c0_6] : memref<128x4xf32, #tpu.memory_space<vmem>>, vector<128x4xf32>
    %10 = arith.truncf %9 : vector<128x4xf32> to vector<128x4xbf16>
    %11 = arith.truncf %8 : vector<8x128xf32> to vector<8x128xbf16>
    %cst_7 = arith.constant dense<0.000000e+00> : vector<8x4xf32>
    %12 = tpu.matmul %11, %10, %cst_7 {dimension_numbers = #tpu.dot_dimension_numbers<[1], [0], [0], [1], [0, 0, 1, 1], [], []>} : vector<8x128xbf16>, vector<128x4xbf16>, vector<8x4xf32> -> vector<8x4xf32>
    %c0_8 = arith.constant 0 : index
    %c0_9 = arith.constant 0 : index
    %13 = vector.load %arg5[%c0_8, %c0_9] : memref<1x4xf32, #tpu.memory_space<vmem>>, vector<1x4xf32>
    %14 = vector.broadcast %13 : vector<1x4xf32> to vector<8x4xf32>
    %15 = arith.addf %12, %14 : vector<8x4xf32>
    %c0_10 = arith.constant 0 : index
    %c0_11 = arith.constant 0 : index
    %16 = vector.load %arg6[%c0_10, %c0_11] : memref<8x4xf32, #tpu.memory_space<vmem>>, vector<8x4xf32>
    tpu.vector_store %arg6[%c0_10, %c0_11], %15 {strides = array<i32>} : memref<8x4xf32, #tpu.memory_space<vmem>>, vector<8x4xf32>,
    return
  }
  func.func @transform_0(%arg0: i32) -> (i32, i32) {
    %c0_i32 = arith.constant 0 : i32
    %c0_i32_0 = arith.constant 0 : i32
    return %arg0, %c0_i32 : i32, i32
  }
  func.func @transform_1(%arg0: i32) -> (i32, i32) {
    %c0_i32 = arith.constant 0 : i32
    %c0_i32_0 = arith.constant 0 : i32
    %c0_i32_1 = arith.constant 0 : i32
    return %c0_i32, %c0_i32_0 : i32, i32
  }
  func.func @transform_2(%arg0: i32) -> (i32, i32) {
    %c0_i32 = arith.constant 0 : i32
    %c0_i32_0 = arith.constant 0 : i32
    %c0_i32_1 = arith.constant 0 : i32
    return %c0_i32, %c0_i32_0 : i32, i32
  }
  func.func @transform_3(%arg0: i32) -> (i32, i32) {
    %c0_i32 = arith.constant 0 : i32
    %c0_i32_0 = arith.constant 0 : i32
    %c0_i32_1 = arith.constant 0 : i32
    return %c0_i32, %c0_i32_0 : i32, i32
  }
  func.func @transform_4(%arg0: i32) -> (i32, i32) {
    %c0_i32 = arith.constant 0 : i32
    %c0_i32_0 = arith.constant 0 : i32
    %c0_i32_1 = arith.constant 0 : i32
    return %c0_i32, %c0_i32_0 : i32, i32
  }
  func.func @transform_5(%arg0: i32) -> (i32, i32) {
    %c0_i32 = arith.constant 0 : i32
    %c0_i32_0 = arith.constant 0 : i32
    return %arg0, %c0_i32 : i32, i32
  }
}

</mosaic_0001>

<bundles_post_ra>
// kernel: tpu_custom_call.1
= control target key start
LH: loop header
LB: loop body
LE: loop exit
PB: predicated region body
PF: predicated region fallthrough
CT: control target
= control target key end

     0   :  { %10 = vsyncpa [#allocation3], 0  ;;  %s514_s18 = smov [#allocation2]   ;;  %s642_s0 = inlined_call_operand.vmem [shape: f32[8,638], index: 0, kind: input, shape index: {}]   ;;  %s643_s1 = inlined_call_operand.hbm [shape: f32[638,128], index: 1, kind: input, shape index: {}]   ;;  %s644_s2 = inlined_call_operand.vmem [shape: f32[1,128], index: 2, kind: input, shape index: {}]   ;;  %s645_s3 = inlined_call_operand.vmem [shape: f32[128,4], index: 3, kind: input, shape index: {}]   ;;  %s646_s4 = inlined_call_operand.vmem [shape: f32[1,4], index: 4, kind: input, shape index: {}]   ;;  %s647_s5 = inlined_call_operand.vmem [shape: f32[8,4], index: 5, kind: output, shape index: {}]  }
   0x1   :  { %s18_s19 = sshll.u32 %s514_s18, 4  ;;  %s19_s19 = int_to_ptr.vmem [resolvable:$true] %s18_s19 }
   0x2   :  { %s500_s20 = scalar_lea.vmem %s19_s19, 10240  ;;  %p505_p1 = scmp.lt.s32.totalorder %s19_s19, %s19_s19 }
   0x3   :  { %p501_p0 = scmp.ne.s32.totalorder %s19_s19, %s500_s20  ;;  %p506_p2 = scmp.lt.s32.totalorder %s500_s20, %s500_s20 }
   0x5   :  { %p507_p3 = por %p506_p2, %p505_p1 }
   0x7   :  { %p508_p4 = pnand %p507_p3, %p501_p0 }
   0x9   :  { %511 = shalt.err (!%p508_p4)
}
   0xa   :  { %s515_s21 = smov 128   ;;  %s516_s22 = smov 8  }
   0xb   :  { %24 = dma.hbm_to_vmem [thread:$0]  %s643_s1, 10240, %s19_s19, [#allocation3], %s515_s21, %s515_s21, %s516_s22  }
   0xc   :  { %512 = dma.done.wait [#allocation3], 10240  }
   0xd   :  { %513 = vsyncadd [#allocation3], 4294957056  ;;  %v75_v0 = vld [vmem:[#allocation2 + $0xf0] sm:$0xff]  ;;  %v76_v1 = vld [vmem:[#allocation2 + $0xf8] sm:$0xff]  ;;  %vm176_vm0 = vcmask 1046528   ;;  %vm518_vm1 = vmmov 0  }
   0xe   :  { %v59_v2 = vld [vmem:[#allocation2 + $0x70] sm:$0xff]  ;;  %v140_v3 = vpack.c.bf16 %v76_v1, %v75_v0  ;;  %v60_v4 = vld [vmem:[#allocation2 + $0x78] sm:$0xff]  ;;  %v73_v11 = vld [vmem:[#allocation2 + $0xe0] sm:$0xff]  ;;  %vm172_vm2 = vcmask 1031168   ;;  %vm373_vm3 = vcmask 31744  }
   0xf   :  { %v107_v5 = vld [vmem:[#allocation2 + $0x1f0] sm:$0xff]  ;;  %v108_v6 = vld [vmem:[#allocation2 + $0x1f8] sm:$0xff]  ;;  %v132_v7 = vpack.c.bf16 %v60_v4, %v59_v2  ;;  %v74_v13 = vld [vmem:[#allocation2 + $0xe8] sm:$0xff] }
  0x10   :  { %v156_v8 = vpack.c.bf16 %v108_v6, %v107_v5  ;;  %v91_v9 = vld [vmem:[#allocation2 + $0x170] sm:$0xff]  ;;  %v92_v10 = vld [vmem:[#allocation2 + $0x178] sm:$0xff]  ;;  %383 = vmatprep.subr.bf16.mxu0 %v140_v3  ;;  %v57_v14 = vld [vmem:[#allocation2 + $0x60] sm:$0xff]  ;;  %v139_v16 = vpack.c.bf16 %v74_v13, %v73_v11 }
  0x11   :  { %v148_v12 = vpack.c.bf16 %v92_v10, %v91_v9  ;;  %v58_v15 = vld [vmem:[#allocation2 + $0x68] sm:$0xff]  ;;  %384 = vmatpush3.bf16.msra.mxu0 %v132_v7  ;;  %v105_v18 = vld [vmem:[#allocation2 + $0x1e0] sm:$0xff]  ;;  %v71_v23 = vld [vmem:[#allocation2 + $0xd0] sm:$0xff] }
  0x12   :  { %405 = vmatprep.subr.bf16.mxu1 %v156_v8  ;;  %v131_v17 = vpack.c.bf16 %v58_v15, %v57_v14  ;;  %v106_v19 = vld [vmem:[#allocation2 + $0x1e8] sm:$0xff]  ;;  %v89_v20 = vld [vmem:[#allocation2 + $0x160] sm:$0xff]  ;;  %v72_v24 = vld [vmem:[#allocation2 + $0xd8] sm:$0xff]  ;;  %385 = vmatprep.subr.bf16.mxu0 %v139_v16 }
  0x13   :  { %406 = vmatpush3.bf16.msra.mxu1 %v148_v12  ;;  %v155_v21 = vpack.c.bf16 %v106_v19, %v105_v18  ;;  %v90_v22 = vld [vmem:[#allocation2 + $0x168] sm:$0xff]  ;;  %v138_v26 = vpack.c.bf16 %v72_v24, %v71_v23  ;;  %v55_v27 = vld [vmem:[#allocation2 + $0x50] sm:$0xff]  ;;  %v56_v28 = vld [vmem:[#allocation2 + $0x58] sm:$0xff] }
  0x14   :  { %v147_v25 = vpack.c.bf16 %v90_v22, %v89_v20  ;;  %v103_v29 = vld [vmem:[#allocation2 + $0x1d0] sm:$0xff]  ;;  %v104_v30 = vld [vmem:[#allocation2 + $0x1d8] sm:$0xff]  ;;  %v130_v33 = vpack.c.bf16 %v56_v28, %v55_v27  ;;  %v69_v35 = vld [vmem:[#allocation2 + $0xc0] sm:$0xff] }
  0x15   :  { %407 = vmatprep.subr.bf16.mxu1 %v155_v21  ;;  %v87_v31 = vld [vmem:[#allocation2 + $0x150] sm:$0xff]  ;;  %v88_v32 = vld [vmem:[#allocation2 + $0x158] sm:$0xff]  ;;  %386 = vmatpush3.bf16.msra.mxu0 %v131_v17  ;;  %v154_v34 = vpack.c.bf16 %v104_v30, %v103_v29  ;;  %v70_v36 = vld [vmem:[#allocation2 + $0xc8] sm:$0xff] }
  0x16   :  { %v53_v37 = vld [vmem:[#allocation2 + $0x40] sm:$0xff]  ;;  %387 = vmatprep.subr.bf16.mxu0 %v138_v26  ;;  %v146_v38 = vpack.c.bf16 %v88_v32, %v87_v31  ;;  %v137_v39 = vpack.c.bf16 %v70_v36, %v69_v35  ;;  %v54_v40 = vld [vmem:[#allocation2 + $0x48] sm:$0xff]  ;;  %v67_v46 = vld [vmem:[#allocation2 + $0xb0] sm:$0xff] }
  0x17   :  { %408 = vmatpush3.bf16.msra.mxu1 %v147_v25  ;;  %v101_v41 = vld [vmem:[#allocation2 + $0x1c0] sm:$0xff]  ;;  %v102_v42 = vld [vmem:[#allocation2 + $0x1c8] sm:$0xff]  ;;  %v68_v47 = vld [vmem:[#allocation2 + $0xb8] sm:$0xff]  ;;  %v129_v48 = vpack.c.bf16 %v54_v40, %v53_v37 }
  0x18   :  { %409 = vmatprep.subr.bf16.mxu1 %v154_v34  ;;  %v153_v43 = vpack.c.bf16 %v102_v42, %v101_v41  ;;  %v85_v44 = vld [vmem:[#allocation2 + $0x140] sm:$0xff]  ;;  %v86_v45 = vld [vmem:[#allocation2 + $0x148] sm:$0xff]  ;;  %v99_v49 = vld [vmem:[#allocation2 + $0x1b0] sm:$0xff]  ;;  %v136_v52 = vpack.c.bf16 %v68_v47, %v67_v46 }
  0x19   :  { %388 = vmatpush3.bf16.msra.mxu0 %v130_v33  ;;  %v100_v50 = vld [vmem:[#allocation2 + $0x1b8] sm:$0xff]  ;;  %v145_v51 = vpack.c.bf16 %v86_v45, %v85_v44  ;;  %v51_v53 = vld [vmem:[#allocation2 + $0x30] sm:$0xff]  ;;  %v65_v58 = vld [vmem:[#allocation2 + $0xa0] sm:$0xff] }
  0x1a   :  { %389 = vmatprep.subr.bf16.mxu0 %v137_v39  ;;  %v52_v54 = vld [vmem:[#allocation2 + $0x38] sm:$0xff]  ;;  %v83_v55 = vld [vmem:[#allocation2 + $0x130] sm:$0xff]  ;;  %v152_v56 = vpack.c.bf16 %v100_v50, %v99_v49  ;;  %v66_v59 = vld [vmem:[#allocation2 + $0xa8] sm:$0xff] }
  0x1b   :  { %410 = vmatpush3.bf16.msra.mxu1 %v146_v38  ;;  %v84_v57 = vld [vmem:[#allocation2 + $0x138] sm:$0xff]  ;;  %v97_v60 = vld [vmem:[#allocation2 + $0x1a0] sm:$0xff]  ;;  %v98_v61 = vld [vmem:[#allocation2 + $0x1a8] sm:$0xff]  ;;  %v128_v62 = vpack.c.bf16 %v52_v54, %v51_v53  ;;  %v135_v0 = vpack.c.bf16 %v66_v59, %v65_v58 }
  0x1c   :  { %411 = vmatprep.subr.bf16.mxu1 %v153_v43  ;;  %v144_v63 = vpack.c.bf16 %v84_v57, %v83_v55  ;;  %v49_v1 = vld [vmem:[#allocation2 + $0x20] sm:$0xff]  ;;  %v50_v2 = vld [vmem:[#allocation2 + $0x28] sm:$0xff]  ;;  %v151_v4 = vpack.c.bf16 %v98_v61, %v97_v60  ;;  %v63_v6 = vld [vmem:[#allocation2 + $0x90] sm:$0xff]  ;;  %v517_v43 = vmov 0.0  }
  0x1d   :  { %390 = vmatpush3.bf16.msra.mxu0 %v129_v48  ;;  %v81_v3 = vld [vmem:[#allocation2 + $0x120] sm:$0xff]  ;;  %v82_v5 = vld [vmem:[#allocation2 + $0x128] sm:$0xff]  ;;  %v64_v7 = vld [vmem:[#allocation2 + $0x98] sm:$0xff]  ;;  %v127_v10 = vpack.c.bf16 %v50_v2, %v49_v1 }
  0x1e   :  { %391 = vmatprep.subr.bf16.mxu0 %v136_v52  ;;  %v95_v8 = vld [vmem:[#allocation2 + $0x190] sm:$0xff]  ;;  %v96_v9 = vld [vmem:[#allocation2 + $0x198] sm:$0xff]  ;;  %v36_v12 = vld [vmem:[%s642_s0 + $0x8] sm:$0xff]  ;;  %v143_v13 = vpack.c.bf16 %v82_v5, %v81_v3  ;;  %v134_v14 = vpack.c.bf16 %v64_v7, %v63_v6 }
  0x1f   :  { %412 = vmatpush3.bf16.msra.mxu1 %v145_v51  ;;  %v47_v11 = vld [vmem:[#allocation2 + $0x10] sm:$0xff]  ;;  %v48_v15 = vld [vmem:[#allocation2 + $0x18] sm:$0xff]  ;;  %v41_v18 = vpack.c.bf16 %v36_v12, %v36_v12  ;;  %v150_v19 = vpack.c.bf16 %v96_v9, %v95_v8  ;;  %v61_v20 = vld [vmem:[#allocation2 + $0x80] sm:$0xff] }
  0x20   :  { %413 = vmatprep.subr.bf16.mxu1 %v152_v56  ;;  %v79_v16 = vld [vmem:[#allocation2 + $0x110] sm:$0xff]  ;;  %v80_v17 = vld [vmem:[#allocation2 + $0x118] sm:$0xff]  ;;  %v62_v21 = vld [vmem:[#allocation2 + $0x88] sm:$0xff]  ;;  %v126_v26 = vpack.c.bf16 %v48_v15, %v47_v11 }
  0x21   :  { %392 = vmatpush3.bf16.msra.mxu0 %v128_v62  ;;  %v38_v22 = vld [vmem:[%s642_s0 + $0x18] sm:$0xff]  ;;  %v93_v23 = vld [vmem:[#allocation2 + $0x180] sm:$0xff]  ;;  %v94_v24 = vld [vmem:[#allocation2 + $0x188] sm:$0xff]  ;;  %212 = vmatprep.mubr.bf16.mxu0 %v41_v18  ;;  %v142_v27 = vpack.c.bf16 %v80_v17, %v79_v16  ;;  %v133_v28 = vpack.c.bf16 %v62_v21, %v61_v20 }
  0x22   :  { %393 = vmatprep.subr.bf16.mxu0 %v135_v0  ;;  %v43_v25 = vpack.c.bf16 %v38_v22, %v38_v22  ;;  %v45_v29 = vld [vmem:[#allocation2] sm:$0xff]  ;;  %v46_v30 = vld [vmem:[#allocation2 + $0x8] sm:$0xff]  ;;  %v149_v32 = vpack.c.bf16 %v94_v24, %v93_v23  ;;  %v123_v34 = vld [vmem:[#allocation2 + $0x270] sm:$0xff] }
  0x23   :  { %414 = vmatpush3.bf16.msra.mxu1 %v144_v63  ;;  %v77_v31 = vld [vmem:[#allocation2 + $0x100] sm:$0xff]  ;;  %v78_v33 = vld [vmem:[#allocation2 + $0x108] sm:$0xff]  ;;  %v124_v35 = vld [vmem:[#allocation2 + $0x278] sm:$0x3f]  ;;  %v125_v36 = vpack.c.bf16 %v46_v30, %v45_v29 }
  0x24   :  { %415 = vmatprep.subr.bf16.mxu1 %v151_v4  ;;  %252 = vmatprep.mubr.bf16.mxu1 %v43_v25  ;;  %v35_v37 = vld [vmem:[%s642_s0] sm:$0xff]  ;;  %v141_v38 = vpack.c.bf16 %v78_v33, %v77_v31  ;;  %v164_v39 = vpack.c.bf16 %v124_v35, %v123_v34  ;;  %v37_v40 = vld [vmem:[%s642_s0 + $0x10] sm:$0xff]  ;;  %v122_v46 = vld [vmem:[#allocation2 + $0x268] sm:$0xff] }
  0x25   :  { %394 = vmatpush3.bf16.msra.mxu0 %v127_v10  ;;  %v40_v41 = vpack.c.bf16 %v35_v37, %v35_v37  ;;  %v42_v42 = vpack.c.bf16 %v37_v40, %v37_v40  ;;  %v121_v45 = vld [vmem:[#allocation2 + $0x260] sm:$0xff]  ;;  %v119_v48 = vld [vmem:[#allocation2 + $0x250] sm:$0xff]  ;;  %v120_v49 = vld [vmem:[#allocation2 + $0x258] sm:$0xff] }
  0x26   :  { %395 = vmatprep.subr.bf16.mxu0 %v134_v14  ;;  %v178_v44 = vsel %vm176_vm0, %v164_v39, 0  ;;  %v163_v47 = vpack.c.bf16 %v122_v46, %v121_v45  ;;  %v162_v50 = vpack.c.bf16 %v120_v49, %v119_v48  ;;  %v117_v51 = vld [vmem:[#allocation2 + $0x240] sm:$0xff]  ;;  %v118_v52 = vld [vmem:[#allocation2 + $0x248] sm:$0xff]  ;;  %v115_v54 = vld [vmem:[#allocation2 + $0x230] sm:$0xff] }
  0x27   :  { %416 = vmatpush3.bf16.msra.mxu1 %v143_v13  ;;  %v161_v53 = vpack.c.bf16 %v118_v52, %v117_v51  ;;  %v116_v55 = vld [vmem:[#allocation2 + $0x238] sm:$0xff]  ;;  %v113_v57 = vld [vmem:[#allocation2 + $0x220] sm:$0xff]  ;;  %v114_v58 = vld [vmem:[#allocation2 + $0x228] sm:$0xff] }
  0x28   :  { %417 = vmatprep.subr.bf16.mxu1 %v150_v19  ;;  %v160_v56 = vpack.c.bf16 %v116_v55, %v115_v54  ;;  %v159_v59 = vpack.c.bf16 %v114_v58, %v113_v57  ;;  %v111_v60 = vld [vmem:[#allocation2 + $0x210] sm:$0xff]  ;;  %v112_v61 = vld [vmem:[#allocation2 + $0x218] sm:$0xff]  ;;  %v109_v63 = vld [vmem:[#allocation2 + $0x200] sm:$0xff] }
  0x29   :  { %396 = vmatpush3.bf16.msra.mxu0 %v126_v26  ;;  %v158_v62 = vpack.c.bf16 %v112_v61, %v111_v60  ;;  %v110_v0 = vld [vmem:[#allocation2 + $0x208] sm:$0xff]  ;;  %v39_v2 = vld [vmem:[%s642_s0 + $0x20] sm:$0xff]  ;;  %v315_v4 = vld [vmem:[%s645_s3 + $0x70] sm:$0xff] }
  0x2a   :  { %397 = vmatprep.subr.bf16.mxu0 %v133_v28  ;;  %v157_v1 = vpack.c.bf16 %v110_v0, %v109_v63  ;;  %v44_v3 = vpack.c.bf16 %v39_v2, %v39_v2  ;;  %v316_v5 = vld [vmem:[%s645_s3 + $0x78] sm:$0xff]  ;;  %v313_v6 = vld [vmem:[%s645_s3 + $0x60] sm:$0xff]  ;;  %v314_v8 = vld [vmem:[%s645_s3 + $0x68] sm:$0xff] }
  0x2b   :  { %418 = vmatpush3.bf16.msra.mxu1 %v142_v27  ;;  %v324_v7 = vpack.c.bf16 %v316_v5, %v315_v4  ;;  %v323_v9 = vpack.c.bf16 %v314_v8, %v313_v6  ;;  %v311_v10 = vld [vmem:[%s645_s3 + $0x50] sm:$0xff]  ;;  %v312_v11 = vld [vmem:[%s645_s3 + $0x58] sm:$0xff]  ;;  %v309_v13 = vld [vmem:[%s645_s3 + $0x40] sm:$0xff] }
  0x2c   :  { %419 = vmatprep.subr.bf16.mxu1 %v149_v32  ;;  %v322_v12 = vpack.c.bf16 %v312_v11, %v311_v10  ;;  %v310_v14 = vld [vmem:[%s645_s3 + $0x48] sm:$0xff]  ;;  %v307_v16 = vld [vmem:[%s645_s3 + $0x30] sm:$0xff]  ;;  %v308_v17 = vld [vmem:[%s645_s3 + $0x38] sm:$0xff] }
  0x2d   :  { %398 = vmatpush3.bf16.msra.mxu0 %v125_v36  ;;  %v321_v15 = vpack.c.bf16 %v310_v14, %v309_v13  ;;  %v320_v18 = vpack.c.bf16 %v308_v17, %v307_v16  ;;  %v305_v19 = vld [vmem:[%s645_s3 + $0x20] sm:$0xff]  ;;  %v306_v20 = vld [vmem:[%s645_s3 + $0x28] sm:$0xff]  ;;  %v303_v22 = vld [vmem:[%s645_s3 + $0x10] sm:$0xff] }
  0x2e   :  { %445 = vmatprep.subr.bf16.mxu0 %v517_v43  ;;  %v319_v21 = vpack.c.bf16 %v306_v20, %v305_v19  ;;  %v304_v23 = vld [vmem:[%s645_s3 + $0x18] sm:$0xff]  ;;  %v301_v25 = vld [vmem:[%s645_s3] sm:$0xff]  ;;  %v302_v26 = vld [vmem:[%s645_s3 + $0x8] sm:$0xff] }
  0x2f   :  { %420 = vmatpush3.bf16.msra.mxu1 %v141_v38  ;;  %v318_v24 = vpack.c.bf16 %v304_v23, %v303_v22  ;;  %v317_v27 = vpack.c.bf16 %v302_v26, %v301_v25  ;;  %v380_v37 = vld [vmem:[%s644_s2] ss:$0 sm:$0xff] }
  0x30   :  { %465 = vmatprep.subr.bf16.mxu1 %v517_v43  ;;  %213 = vmatmul.mubr.bf16.vlgmr.msra.gmra.mxu0 %v40_v41  ;;  %v382_v48 = vld [vmem:[%s646_s4] ss:$0 sm:$0xff] }
  0x31   :  { %446 = vmatpush3.bf16.msra.mxu0 %v178_v44  ;;  %461 = vmatprep.mubr.msk.bf16.mxu0 %vm518_vm1, %v517_v43 }
  0x32   :  { %253 = vmatmul.mubr.bf16.vlgmr.msra.gmra.mxu1 %v42_v42  ;;  %447 = vmatprep.subr.bf16.mxu0 %v517_v43 }
  0x33   :  { %481 = vmatprep.mubr.msk.bf16.mxu1 %vm518_vm1, %v517_v43  ;;  %466 = vmatpush3.bf16.msra.mxu1 %v324_v7 }
  0x34   :  { %467 = vmatprep.subr.bf16.mxu1 %v517_v43 }
  0x35   :  { %448 = vmatpush3.bf16.msra.mxu0 %v163_v47 }
  0x36   :  { %449 = vmatprep.subr.bf16.mxu0 %v517_v43 }
  0x37   :  { %468 = vmatpush3.bf16.msra.mxu1 %v323_v9 }
  0x38   :  { %469 = vmatprep.subr.bf16.mxu1 %v517_v43 }
  0x39   :  { %450 = vmatpush3.bf16.msra.mxu0 %v162_v50 }
  0x3a   :  { %451 = vmatprep.subr.bf16.mxu0 %v517_v43 }
  0x3b   :  { %470 = vmatpush3.bf16.msra.mxu1 %v322_v12 }
  0x3c   :  { %471 = vmatprep.subr.bf16.mxu1 %v517_v43 }
  0x3d   :  { %452 = vmatpush3.bf16.msra.mxu0 %v161_v53 }
  0x3e   :  { %453 = vmatprep.subr.bf16.mxu0 %v517_v43 }
  0x3f   :  { %472 = vmatpush3.bf16.msra.mxu1 %v321_v15 }
  0x40   :  { %473 = vmatprep.subr.bf16.mxu1 %v517_v43 }
  0x41   :  { %454 = vmatpush3.bf16.msra.mxu0 %v160_v56 }
  0x42   :  { %455 = vmatprep.subr.bf16.mxu0 %v517_v43 }
  0x43   :  { %474 = vmatpush3.bf16.msra.mxu1 %v320_v18 }
  0x44   :  { %475 = vmatprep.subr.bf16.mxu1 %v517_v43 }
  0x45   :  { %456 = vmatpush3.bf16.msra.mxu0 %v159_v59 }
  0x46   :  { %457 = vmatprep.subr.bf16.mxu0 %v517_v43 }
  0x47   :  { %476 = vmatpush3.bf16.msra.mxu1 %v319_v21 }
  0x48   :  { %477 = vmatprep.subr.bf16.mxu1 %v517_v43 }
  0x49   :  { %458 = vmatpush3.bf16.msra.mxu0 %v158_v62 }
  0x4a   :  { %459 = vmatprep.subr.bf16.mxu0 %v517_v43 }
  0x4b   :  { %478 = vmatpush3.bf16.msra.mxu1 %v318_v24 }
  0x4c   :  { %479 = vmatprep.subr.bf16.mxu1 %v517_v43 }
  0x4d   :  { %460 = vmatpush3.bf16.msra.mxu0 %v157_v1 }
  0x4f   :  { %480 = vmatpush3.bf16.msra.mxu1 %v317_v27 }
  0x50   :  { %462 = vmatmul.mubr.msk.bf16.vlgmr.msra.gmra.mxu0 %vm172_vm2, %v44_v3 }
  0xf0   :  { %v399_v28 = vpop.f32.mrf.mxu0 }
  0xf2   :  { %v421_v29 = vpop.f32.mrf.mxu1  ;;  %v400_v30 = vpop.f32.mrf.mxu0 }
  0xf3   :  { %v401_v36 = vadd.f32 %v400_v30, %v399_v28 }
  0xf4   :  { %v422_v31 = vpop.f32.mrf.mxu1  ;;  %v402_v32 = vpop.f32.mrf.mxu0 }
  0xf5   :  { %v215_v38 = vadd.f32 %v401_v36, %v380_v37  ;;  %v423_v39 = vadd.f32 %v422_v31, %v421_v29 }
  0xf6   :  { %v424_v33 = vpop.f32.mrf.mxu1  ;;  %v403_v34 = vpop.f32.mrf.mxu0 }
  0xf7   :  { %v255_v40 = vadd.f32 %v423_v39, %v215_v38 }
  0xf8   :  { %v425_v35 = vpop.f32.mrf.mxu1 }
 0x110   :  { %v294_v41 = vpop.f32.mrf.mxu0 }
 0x111   :  { %v295_v42 = vadd.f32 %v294_v41, %v255_v40 }
 0x112   :  { %v463_v43 = vpop.f32.mrf.mxu0 }
 0x113   :  { %490 = vtanh.f32 %v295_v42 }
 0x114   :  { %v297_v44 = vpop.f32.mrf.mxu0 }
 0x116   :  { %v464_v45 = vpop.f32.mrf.mxu0 }
 0x120   :  { %v491_v46 = vpop.eup %490 }
 0x121   :  { %v325_v47 = vpack.c.bf16 %v491_v46, %v491_v46 }
 0x123   :  { %482 = vmatmul.mubr.bf16.vlgmr.msra.gmra.mxu1 %v325_v47 }
 0x1e3   :  { %v367_v49 = vpop.f32.mrf.mxu1 }
 0x1e4   :  { %v368_v50 = vadd.f32 %v382_v48, %v367_v49 }
 0x1e5   :  { %v483_v51 = vpop.f32.mrf.mxu1 }
 0x1e6   :  { %374 = vst.msk [vmem:[%s647_s5] sm:$0xff] %vm373_vm3, %v368_v50 }
 0x1e7   :  { %v370_v52 = vpop.f32.mrf.mxu1 }
 0x1e9   :  { %v484_v53 = vpop.f32.mrf.mxu1 }
 0x1ea   :  { %379 = vsyncpa [#allocation3], 1 }

</bundles_post_ra>
